<compile_context>
chip_gen: v6e
topology: v6e:2x2x1
jax: 0.10.0
libtpu: 0.0.40
codegen_flags: <defaults>
</compile_context>

<pallas_src>
import functools

import numpy as np
import jax
import jax.numpy as jnp
from jax.experimental import pallas as pl
from jax.experimental.pallas import tpu as pltpu

LANE = 128
SUBLANES = 8
TILE = SUBLANES * LANE          # 1024 elements: minimal f32 (8,128) tile
MAX_BLOCK_ROWS = 2048           # (2048,128) f32 = 1 MiB per input per block


def _round_up(a, b):
    return (a + b - 1) // b * b


def _exp_loss_kernel(x_ref, t_ref, loss_ref, acc_ref, *,
                     block_rows, valid_rows_last, denom):
    i = pl.program_id(0)
    last = pl.num_programs(0) - 1

    @pl.when(i == 0)
    def _():
        acc_ref[...] = jnp.zeros_like(acc_ref)

    x = x_ref[...].astype(jnp.float32)
    t = t_ref[...].astype(jnp.float32)
    # loss = exp(-(output * (2*target - 1)))  (mul/sub on VALU, exp on EUP)
    val = jnp.exp(-(x * (2.0 * t - 1.0)))               # (block_rows, LANE)

    def _accumulate(v):
        # (block_rows,128)->(block_rows/8,8,128) is a free blocked view; the
        # sum over axis 0 is element-wise vreg adds (VALU only, no XLU).
        acc_ref[...] += v.reshape(block_rows // SUBLANES, SUBLANES, LANE).sum(axis=0)

    if valid_rows_last < block_rows:
        # Only the final (ragged) block needs masking of out-of-bounds rows.
        @pl.when(i != last)
        def _():
            _accumulate(val)

        @pl.when(i == last)
        def _():
            ridx = jax.lax.broadcasted_iota(jnp.int32, val.shape, 0)
            _accumulate(jnp.where(ridx < valid_rows_last, val, 0.0))
    else:
        _accumulate(val)

    @pl.when(i == last)
    def _():
        total = jnp.sum(acc_ref[...])          # one-time cross-lane reduce
        if denom != 1.0:
            total = total / jnp.float32(denom)
        loss_ref[0, 0] = total


def exp_loss(output, target, reduction="mean", max_block_rows=MAX_BLOCK_ROWS):
    if reduction not in ("mean", "sum"):
        raise Exception("Sorry, reduction of loss must be mean or sum")
    assert output.shape == target.shape
    assert max_block_rows % SUBLANES == 0

    total = int(np.prod(output.shape, dtype=np.int64))
    if total == 0:
        # Matches torch: mean of empty -> nan, sum of empty -> 0.
        return jnp.float32(jnp.nan) if reduction == "mean" else jnp.float32(0.0)

    # Keep original dtypes in HBM; the widening to f32 happens in-VMEM.
    x = jnp.ravel(output)
    t = jnp.ravel(target)

    padded_total = _round_up(total, TILE)
    if padded_total != total:
        # Rare ragged tail: pad with (output=100, target=1) so padded elements
        # contribute exp(-100) ~= 0 and need no in-kernel masking.
        # TODO(synk): handle the tail without a full-array pad copy.
        pad = padded_total - total
        x = jnp.pad(x, (0, pad), constant_values=100)
        t = jnp.pad(t, (0, pad), constant_values=1)

    rows = padded_total // LANE                     # always a multiple of 8
    x2 = x.reshape(rows, LANE)                      # free reshape, no copy
    t2 = t.reshape(rows, LANE)

    # block_rows is either the full row extent (single block) or a large
    # multiple-of-8 row block; the last block may be ragged (masked in-kernel).
    block_rows = min(max_block_rows, rows)
    num_blocks = (rows + block_rows - 1) // block_rows
    valid_rows_last = rows - (num_blocks - 1) * block_rows

    denom = float(total) if reduction == "mean" else 1.0
    kernel = functools.partial(
        _exp_loss_kernel,
        block_rows=block_rows,
        valid_rows_last=valid_rows_last,
        denom=denom,
    )

    result = pl.pallas_call(
        kernel,
        out_shape=jax.ShapeDtypeStruct((1, 1), jnp.float32),
        grid_spec=pltpu.PrefetchScalarGridSpec(
            num_scalar_prefetch=0,
            grid=(num_blocks,),
            in_specs=[
                pl.BlockSpec((block_rows, LANE), lambda i: (i, 0)),
                pl.BlockSpec((block_rows, LANE), lambda i: (i, 0)),
            ],
            out_specs=pl.BlockSpec((1, 1), lambda i: (0, 0),
                                   memory_space=pltpu.SMEM),
            scratch_shapes=[pltpu.VMEM((SUBLANES, LANE), jnp.float32)],
        ),
        compiler_params=pltpu.CompilerParams(
            dimension_semantics=("arbitrary",),
            vmem_limit_bytes=32 * 1024 * 1024,
        ),
        # TODO(synk): on v7x, add a leading size-2 "parallel" grid axis with
        # per-core partial sums (combined in the wrapper) to use both TCs.
    )(x2, t2)

    return result[0, 0]


def exp_loss_ref(output, target, reduction="mean"):
    t = 2.0 * target.astype(jnp.float32) - 1.0
    loss = jnp.exp(-(output.astype(jnp.float32) * t))
    return jnp.mean(loss) if reduction == "mean" else jnp.sum(loss)


if __name__ == "__main__":
    key = jax.random.PRNGKey(0)
    k1, k2, k3, k4 = jax.random.split(key, 4)

    # Typical NCHW logits / binary targets.
    output = jax.random.normal(k1, (2, 4, 16, 16), dtype=jnp.float32)
    target = (jax.random.uniform(k2, (2, 4, 16, 16)) > 0.5).astype(jnp.float32)

    cases = [
        (output, target, "mean", MAX_BLOCK_ROWS),
        (output, target, "sum", MAX_BLOCK_ROWS),
    ]

    # Ragged element count (exercises the exp-zero tail-padding path).
    out_r = jax.random.normal(k3, (3, 5, 7), dtype=jnp.float32)
    tgt_r = (jax.random.uniform(k4, (3, 5, 7)) > 0.5).astype(jnp.float32)
    cases.append((out_r, tgt_r, "mean", MAX_BLOCK_ROWS))

    # Multi-block grid with a ragged (masked) last block: rows=24, block=16.
    out_m = jax.random.normal(k1, (3, 1024), dtype=jnp.float32)
    tgt_m = (jax.random.uniform(k2, (3, 1024)) > 0.5).astype(jnp.float32)
    cases.append((out_m, tgt_m, "sum", 16))

    for o, tg, reduction, mbr in cases:
        got = jax.block_until_ready(exp_loss(o, tg, reduction, max_block_rows=mbr))
        want = exp_loss_ref(o, tg, reduction)
        np.testing.assert_allclose(np.asarray(got), np.asarray(want),
                                   rtol=1e-5, atol=1e-5)

    print("KERNEL_OK")
</pallas_src>

<mosaic_0001>
module attributes {stable_mosaic.version = 11 : i64} {
  func.func @_exp_loss_kernel(%arg0: i32, %arg1: memref<16x128xf32, #tpu.memory_space<vmem>>, %arg2: memref<16x128xf32, #tpu.memory_space<vmem>>, %arg3: memref<1x1xf32, #tpu.memory_space<smem>>, %arg4: memref<8x128xf32, #tpu.memory_space<vmem>>) attributes {dimension_semantics = [#tpu.dimension_semantics<arbitrary>], iteration_bounds = array<i64: 1>, scalar_prefetch = 0 : i64, scratch_operands = 1 : i64, tpu.core_type = #tpu.core_type<tc>, window_params = [{transform_indices = @transform_0, window_bounds = array<i64: 16, 128>}, {transform_indices = @transform_1, window_bounds = array<i64: 16, 128>}, {transform_indices = @transform_2, window_bounds = array<i64: 1, 1>}]} {
    %c0_i32 = arith.constant 0 : i32
    %0 = arith.cmpi eq, %arg0, %c0_i32 : i32
    %1 = arith.extui %0 : i1 to i32
    %c0_i32_0 = arith.constant 0 : i32
    %2 = arith.cmpi ne, %1, %c0_i32_0 : i32
    scf.if %2 {
      %cst_13 = arith.constant 0.000000e+00 : f32
      %21 = vector.broadcast %cst_13 : f32 to vector<8x128xf32>
      %c0_14 = arith.constant 0 : index
      %c0_15 = arith.constant 0 : index
      %22 = vector.load %arg4[%c0_14, %c0_15] : memref<8x128xf32, #tpu.memory_space<vmem>>, vector<8x128xf32>
      tpu.vector_store %arg4[%c0_14, %c0_15], %21 {strides = array<i32>} : memref<8x128xf32, #tpu.memory_space<vmem>>, vector<8x128xf32>,
    } else {
    }
    %c0 = arith.constant 0 : index
    %c0_1 = arith.constant 0 : index
    %3 = vector.load %arg1[%c0, %c0_1] : memref<16x128xf32, #tpu.memory_space<vmem>>, vector<16x128xf32>
    %c0_2 = arith.constant 0 : index
    %c0_3 = arith.constant 0 : index
    %4 = vector.load %arg2[%c0_2, %c0_3] : memref<16x128xf32, #tpu.memory_space<vmem>>, vector<16x128xf32>
    %cst = arith.constant 2.000000e+00 : f32
    %5 = vector.broadcast %cst : f32 to vector<16x128xf32>
    %6 = arith.mulf %5, %4 : vector<16x128xf32>
    %cst_4 = arith.constant 1.000000e+00 : f32
    %7 = vector.broadcast %cst_4 : f32 to vector<16x128xf32>
    %8 = arith.subf %6, %7 : vector<16x128xf32>
    %9 = arith.mulf %3, %8 : vector<16x128xf32>
    %cst_5 = arith.constant 0.000000e+00 : f32
    %10 = vector.broadcast %cst_5 : f32 to vector<16x128xf32>
    %11 = arith.subf %10, %9 : vector<16x128xf32>
    %12 = math.exp %11 : vector<16x128xf32>
    %c0_6 = arith.constant 0 : index
    %c0_7 = arith.constant 0 : index
    %13 = vector.load %arg4[%c0_6, %c0_7] : memref<8x128xf32, #tpu.memory_space<vmem>>, vector<8x128xf32>
    %14 = vector.shape_cast %12 : vector<16x128xf32> to vector<2x8x128xf32>
    %cst_8 = arith.constant dense<0.000000e+00> : vector<8x128xf32>
    %15 = vector.multi_reduction <add>, %14, %cst_8 [0] : vector<2x8x128xf32> to vector<8x128xf32>
    %16 = arith.addf %13, %15 : vector<8x128xf32>
    %c0_9 = arith.constant 0 : index
    %c0_10 = arith.constant 0 : index
    %17 = vector.load %arg4[%c0_9, %c0_10] : memref<8x128xf32, #tpu.memory_space<vmem>>, vector<8x128xf32>
    tpu.vector_store %arg4[%c0_9, %c0_10], %16 {strides = array<i32>} : memref<8x128xf32, #tpu.memory_space<vmem>>, vector<8x128xf32>,
    %c0_i32_11 = arith.constant 0 : i32
    %18 = arith.cmpi eq, %arg0, %c0_i32_11 : i32
    %19 = arith.extui %18 : i1 to i32
    %c0_i32_12 = arith.constant 0 : i32
    %20 = arith.cmpi ne, %19, %c0_i32_12 : i32
    scf.if %20 {
      %c0_13 = arith.constant 0 : index
      %c0_14 = arith.constant 0 : index
      %21 = vector.load %arg4[%c0_13, %c0_14] : memref<8x128xf32, #tpu.memory_space<vmem>>, vector<8x128xf32>
      %22 = vector.shape_cast %21 : vector<8x128xf32> to vector<1x8x128xf32>
      %cst_15 = arith.constant dense<0.000000e+00> : vector<1xf32>
      %23 = vector.multi_reduction <add>, %22, %cst_15 [1, 2] : vector<1x8x128xf32> to vector<1xf32>
      %24 = vector.shape_cast %23 : vector<1xf32> to vector<1x1x1xf32>
      %25 = vector.extract %24[0, 0, 0] : f32 from vector<1x1x1xf32>
      %cst_16 = arith.constant 2.048000e+03 : f32
      %26 = arith.divf %25, %cst_16 : f32
      %c0_17 = arith.constant 0 : index
      %c0_18 = arith.constant 0 : index
      %27 = memref.load %arg3[%c0_17, %c0_18] : memref<1x1xf32, #tpu.memory_space<smem>>
      memref.store %26, %arg3[%c0_17, %c0_18] : memref<1x1xf32, #tpu.memory_space<smem>>
    } else {
    }
    return
  }
  func.func @transform_0(%arg0: i32) -> (i32, i32) {
    %c0_i32 = arith.constant 0 : i32
    %c0_i32_0 = arith.constant 0 : i32
    return %arg0, %c0_i32 : i32, i32
  }
  func.func @transform_1(%arg0: i32) -> (i32, i32) {
    %c0_i32 = arith.constant 0 : i32
    %c0_i32_0 = arith.constant 0 : i32
    return %arg0, %c0_i32 : i32, i32
  }
  func.func @transform_2(%arg0: i32) -> (i32, i32) {
    %c0_i32 = arith.constant 0 : i32
    %c0_i32_0 = arith.constant 0 : i32
    %c0_i32_1 = arith.constant 0 : i32
    return %c0_i32, %c0_i32_0 : i32, i32
  }
}

</mosaic_0001>

<bundles_post_ra>
// kernel: tpu_custom_call.1
= control target key start
LH: loop header
LB: loop body
LE: loop exit
PB: predicated region body
PF: predicated region fallthrough
CT: control target
= control target key end

     0   :  { %7 = vsyncpa [#allocation4], 0  ;;  %s194_s0 = inlined_call_operand.hbm [shape: f32[16,128], index: 0, kind: input, shape index: {}]   ;;  %s195_s1 = inlined_call_operand.hbm [shape: f32[16,128], index: 1, kind: input, shape index: {}]   ;;  %s196_s2 = inlined_call_operand.hbm [shape: f32[1,1], index: 2, kind: output, shape index: {}]  }
   0x1   :  { %8 = vsyncpa [#allocation7], 0 }
   0x2   :  { %9 = vsyncpa [#allocation5], 0  ;;  %s165_s9 = smov [#allocation3]  }
   0x3   :  { %s15_s10 = sshll.u32 %s165_s9, 4  ;;  %s16_s10 = int_to_ptr.vmem [resolvable:$true] %s15_s10 }
   0x4   :  { %s119_s11 = scalar_lea.vmem %s16_s10, 256  ;;  %p124_p1 = scmp.lt.s32.totalorder %s16_s10, %s16_s10 }
   0x5   :  { %p120_p0 = scmp.ne.s32.totalorder %s16_s10, %s119_s11  ;;  %p125_p2 = scmp.lt.s32.totalorder %s119_s11, %s119_s11 }
   0x7   :  { %p126_p3 = por %p125_p2, %p124_p1 }
   0x9   :  { %p127_p4 = pnand %p126_p3, %p120_p0 }
   0xb   :  { %130 = shalt.err (!%p127_p4)
}
   0xc   :  { %s166_s12 = smov 128   ;;  %s167_s13 = smov 8  }
   0xd   :  { %21 = dma.hbm_to_vmem [thread:$0]  %s194_s0, 256, %s16_s10, [#allocation4], %s166_s12, %s166_s12, %s167_s13  }
   0xe   :  { %s168_s16 = smov [#allocation6]  }
   0xf   :  { %s27_s17 = sshll.u32 %s168_s16, 4  ;;  %s28_s17 = int_to_ptr.vmem [resolvable:$true] %s27_s17 }
  0x10   :  { %s139_s18 = scalar_lea.vmem %s28_s17, 256  ;;  %p144_p6 = scmp.lt.s32.totalorder %s28_s17, %s28_s17 }
  0x11   :  { %p140_p5 = scmp.ne.s32.totalorder %s28_s17, %s139_s18  ;;  %p145_p7 = scmp.lt.s32.totalorder %s139_s18, %s139_s18 }
  0x13   :  { %p146_p8 = por %p145_p7, %p144_p6 }
  0x15   :  { %p147_p9 = pnand %p146_p8, %p140_p5 }
  0x17   :  { %150 = shalt.err (!%p147_p9)
}
  0x18   :  { %33 = dma.hbm_to_vmem [thread:$0]  %s195_s1, 256, %s28_s17, [#allocation7], %s166_s12, %s166_s12, %s167_s13  }
  0x19   :  { %159 = dma.done.wait [#allocation4], 256  }
  0x1a   :  { %160 = vsyncadd [#allocation4], 4294967040 }
  0x1b   :  { %161 = dma.done.wait [#allocation7], 256  }
  0x1c   :  { %162 = vsyncadd [#allocation7], 4294967040  ;;  %v47_v0 = vld [vmem:[#allocation6] sm:$0xff]  ;;  %v48_v1 = vld [vmem:[#allocation6 + $0x8] sm:$0xff]  ;;  %s169_s21 = smov [#allocation8]  }
  0x1d   :  { %v49_v2 = vmul.f32 2.0, %v47_v0  ;;  %v45_v3 = vld [vmem:[#allocation3] sm:$0xff]  ;;  %v50_v4 = vmul.f32 2.0, %v48_v1  ;;  %v46_v5 = vld [vmem:[#allocation3 + $0x8] sm:$0xff] }
  0x1f   :  { %v98_v6 = vadd.f32 -1.0, %v49_v2  ;;  %v99_v7 = vadd.f32 -1.0, %v50_v4 }
  0x21   :  { %v53_v8 = vmul.f32 %v98_v6, %v45_v3  ;;  %v54_v9 = vmul.f32 %v99_v7, %v46_v5 }
  0x23   :  { %v55_v10 = vsub.f32 0.0, %v53_v8  ;;  %v56_v11 = vsub.f32 0.0, %v54_v9 }
  0x25   :  { %v57_v12 = vmul.f32 1.442695, %v55_v10  ;;  %v59_v13 = vmul.f32 1.442695, %v56_v11 }
  0x27   :  { %107 = vpow2.f32 %v57_v12 }
  0x28   :  { %109 = vpow2.f32 %v59_v13 }
  0x34   :  { %v108_v14 = vpop.eup %107 }
  0x35   :  { %v110_v15 = vpop.eup %109 }
  0x36   :  { %v62_v16 = vadd.f32 %v110_v15, %v108_v14 }
  0x38   :  { %69 = vadd.xlane.f32.xlu0 %v62_v16 }
  0xc1   :  { %v70_v17 = vpop.xlane.xlu0 %69 }
  0xc2   :  { %v71_v18 = vrot.slane %v70_v17, 4 }
  0xc4   :  { %v72_v19 = vadd.f32 %v71_v18, %v70_v17 }
  0xc6   :  { %v73_v20 = vrot.slane %v72_v19, 2 }
  0xc8   :  { %v74_v21 = vadd.f32 %v73_v20, %v72_v19 }
  0xca   :  { %v75_v22 = vrot.slane %v74_v21, 1 }
  0xcc   :  { %v76_v23 = vadd.f32 %v75_v22, %v74_v21 }
  0xce   :  { %100 = vpush %v76_v23 }
  0xff   :  { %s101_s0 = spop %100 }
 0x100   :  { %s80_s1 = smul.f32 0.00048828125, %s101_s0 }
 0x102   :  { %82 = sst [smem:[#allocation8]] %s80_s1 }
 0x103   :  { %90 = dma.smem_to_hbm %s169_s21, 16, %s196_s2, [#allocation5]  }
 0x104   :  { %163 = dma.done.wait [#allocation5], 16  }
 0x105   :  { %164 = vsyncadd [#allocation5], 4294967280 }
 0x106   :  { %94 = sfence }
 0x107   :  { %95 = vsyncpa [#allocation4], 1 }
 0x108   :  { %96 = vsyncpa [#allocation7], 1 }
 0x109   :  { %97 = vsyncpa [#allocation5], 1 }

</bundles_post_ra>
